<compile_context>
chip_gen: v7x
topology: tpu7x:2x2x1
jax: 0.10.0
libtpu: 0.0.40
codegen_flags: <defaults>
</compile_context>

<pallas_src>
import math

import jax
import jax.numpy as jnp
from jax.experimental import pallas as pl
from jax.experimental.pallas import tpu as pltpu


def _cdiv(a, b):
    return -(-a // b)


def _round_up(a, m):
    return _cdiv(a, m) * m


# ------------------------------------------------------------------ kernel ---
def _discriminator_kernel(x_ref,
                          w1_ref, b1_ref,
                          w2_ref, b2_ref,
                          w3_ref, b3_ref,
                          whead_ref, bhead_ref,
                          disc_ref, hidden_ref):
    neg_slope = jnp.float32(0.01)  # nn.LeakyReLU default

    # bf16 operands on the MXU, f32 accumulation; elementwise math stays f32.
    # If x already arrives bf16 (preferred, halves input HBM traffic) no cast is done.
    xv = x_ref[...]
    xb = xv if xv.dtype == jnp.bfloat16 else xv.astype(jnp.bfloat16)

    # feature_extractor layer 1: Linear(F, 2L) + LeakyReLU
    h = jnp.dot(xb, w1_ref[...], preferred_element_type=jnp.float32) + b1_ref[...]
    h = jnp.where(h > 0, h, neg_slope * h)

    # feature_extractor layer 2: Linear(2L, 2L) + LeakyReLU
    h = jnp.dot(h.astype(jnp.bfloat16), w2_ref[...],
                preferred_element_type=jnp.float32) + b2_ref[...]
    h = jnp.where(h > 0, h, neg_slope * h)

    # discriminate head: fused (w3 @ wd) row -> VPU multiply + lane reduction
    # (avoids an N=1 MXU matmul and the serial hidden -> disc dependency).
    logit = jnp.sum(h * whead_ref[...], axis=-1, keepdims=True) + bhead_ref[0]
    disc_ref[...] = jax.nn.sigmoid(logit).astype(disc_ref.dtype)

    # feature_extractor layer 3: Linear(2L, F) -> hidden
    hidden = jnp.dot(h.astype(jnp.bfloat16), w3_ref[...],
                     preferred_element_type=jnp.float32) + b3_ref[...]
    hidden_ref[...] = hidden.astype(hidden_ref.dtype)


# ------------------------------------------------------------- tile chooser --
def _choose_tile(batch, block_b):
    """Batch tile: >=4 grid steps when possible, even step count, multiple of 16."""
    tb = min(block_b, max(16, _round_up(_cdiv(batch, 4), 16)))
    if tb >= batch and batch > 8:                    # tiny batches: still get 2 steps
        tb = max(8, _round_up(_cdiv(batch, 2), 8))
    n = _cdiv(batch, tb)
    if n > 1 and n % 2 == 1:                         # avoid 2:1 core imbalance on v7x
        tb = max(8, _round_up(_cdiv(batch, n + 1), 8))
        n = _cdiv(batch, tb)
    return tb, n


# ----------------------------------------------------------------- wrapper ---
def discriminator_forward(x, params, *, block_b=512, hidden_dtype=None):
    """x: [B, in_feature] (f32 or bf16).  Returns (disc [B,1] f32, hidden [B,F])."""
    B, F = x.shape
    w1, b1, w2, b2, w3, b3, wd, bd = params
    L2 = w1.shape[1]
    hidden_dtype = jnp.dtype(jnp.float32 if hidden_dtype is None else hidden_dtype)

    # Pre-fuse the discriminator head: hidden @ wd + bd == h @ (w3 @ wd) + (b3 @ wd + bd)
    whead = (w3 @ wd).reshape(1, L2).astype(jnp.float32)   # [1, 2L] row for VPU broadcast
    bhead = (b3 @ wd + bd).reshape(1).astype(jnp.float32)  # scalar -> SMEM

    # bf16 weights for the MXU (biases stay f32; added after f32 accumulation).
    w1b = w1.astype(jnp.bfloat16)
    w2b = w2.astype(jnp.bfloat16)
    w3b = w3.astype(jnp.bfloat16)

    # Batch tiling (>=4 steps, even when possible -> megacore split + pipelining).
    TB, n_blocks = _choose_tile(B, block_b)
    B_pad = n_blocks * TB
    if B_pad != B:
        x = jnp.pad(x, ((0, B_pad - B), (0, 0)))

    batch_map = lambda i: (i, 0)   # activations walk the batch axis
    const_map = lambda i: (0, 0)   # weights/biases stay resident in VMEM

    # VMEM budget derived from the actual (double-buffered) tile footprint.
    act_bytes = TB * F * (x.dtype.itemsize + hidden_dtype.itemsize) + TB * 128 * 4
    w_bytes = (2 * (w1b.size + w2b.size + w3b.size)
               + 4 * (b1.size + b2.size + b3.size + whead.size))
    vmem_need = 2 * (act_bytes + w_bytes)
    vmem_limit = int(min(max(2 * vmem_need, 16 << 20), 64 << 20))   # v7x-safe

    flops = 2 * B_pad * (F * L2 + L2 * L2 + L2 * F + L2)
    bytes_accessed = int(B_pad * F * (x.dtype.itemsize + hidden_dtype.itemsize)
                         + B_pad * 4 + w_bytes)

    disc, hidden = pl.pallas_call(
        _discriminator_kernel,
        out_shape=(
            jax.ShapeDtypeStruct((B_pad, 1), jnp.float32),     # disc
            jax.ShapeDtypeStruct((B_pad, F), hidden_dtype),    # hidden
        ),
        grid=(n_blocks,),
        in_specs=[
            pl.BlockSpec((TB, F), batch_map),                      # x tile (f32 or bf16)
            pl.BlockSpec((F, L2), const_map),                      # w1 (bf16, resident)
            pl.BlockSpec((1, L2), const_map),                      # b1
            pl.BlockSpec((L2, L2), const_map),                     # w2 (bf16, resident)
            pl.BlockSpec((1, L2), const_map),                      # b2
            pl.BlockSpec((L2, F), const_map),                      # w3 (bf16, resident)
            pl.BlockSpec((1, F), const_map),                       # b3
            pl.BlockSpec((1, L2), const_map),                      # fused head row
            pl.BlockSpec(memory_space=pltpu.MemorySpace.SMEM),     # fused head bias (scalar)
        ],
        out_specs=(
            pl.BlockSpec((TB, 1), batch_map),
            pl.BlockSpec((TB, F), batch_map),
        ),
        compiler_params=pltpu.CompilerParams(
            dimension_semantics=("parallel",),     # megacore split on v7x; no-op on v5e/v6e
            vmem_limit_bytes=vmem_limit,
        ),
        cost_estimate=pl.CostEstimate(
            flops=flops,
            transcendentals=B_pad,                 # one sigmoid per row
            bytes_accessed=bytes_accessed,
        ),
    )(x, w1b, b1, w2b, b2, w3b, b3, whead, bhead)

    if B_pad != B:
        disc = disc[:B]
        hidden = hidden[:B]
    return disc, hidden


# ------------------------------------------------------- deterministic init --
def _xavier_uniform(key, fan_in, fan_out, gain=1.0):
    # matches torch.nn.init.xavier_uniform_ (weight [out, in]); we return [in, out].
    bound = gain * math.sqrt(6.0 / (fan_in + fan_out))
    return jax.random.uniform(key, (fan_in, fan_out), jnp.float32,
                              minval=-bound, maxval=bound)


def make_params(key, in_feature, latent_dim):
    L2 = latent_dim * 2
    ks = jax.random.split(key, 4)
    w1 = _xavier_uniform(ks[0], in_feature, L2)
    b1 = jnp.zeros((1, L2), jnp.float32)        # weights_init zeros biases
    w2 = _xavier_uniform(ks[1], L2, L2)
    b2 = jnp.zeros((1, L2), jnp.float32)
    w3 = _xavier_uniform(ks[2], L2, in_feature)
    b3 = jnp.zeros((1, in_feature), jnp.float32)
    wd = _xavier_uniform(ks[3], in_feature, 1)
    bd = jnp.zeros((1, 1), jnp.float32)
    return (w1, b1, w2, b2, w3, b3, wd, bd)


# ------------------------------------------------------------------ reference
def _reference(x, params):
    # Pure-f32 reference with the unfused head (matches the PyTorch module).
    w1, b1, w2, b2, w3, b3, wd, bd = params
    leaky = lambda v: jnp.where(v > 0, v, 0.01 * v)
    h = leaky(x @ w1 + b1)
    h = leaky(h @ w2 + b2)
    hidden = h @ w3 + b3
    disc = jax.nn.sigmoid(hidden @ wd + bd)
    return disc, hidden


if __name__ == "__main__":
    # Small shapes consistent with the module (defaults 512/128 scaled down,
    # dims kept as multiples of 128 per the MXU-width guidance).
    B, in_feature, latent_dim = 256, 256, 64

    key = jax.random.PRNGKey(0)
    k_x, k_p = jax.random.split(key)
    x = jax.random.normal(k_x, (B, in_feature), jnp.float32)
    params = make_params(k_p, in_feature, latent_dim)

    disc_ref, hidden_ref = _reference(x, params)

    # 1) f32 x / f32 hidden (module-faithful dtypes); block_b=64 -> TB=64, grid=(4,)
    #    so the batch-tiled pipeline and even megacore split are exercised.
    disc, hidden = jax.block_until_ready(
        discriminator_forward(x, params, block_b=64))
    assert disc.shape == (B, 1) and hidden.shape == (B, in_feature)
    # bf16 MXU operands with f32 accumulation -> loosened tolerances.
    assert jnp.allclose(disc, disc_ref, atol=2e-2), \
        float(jnp.max(jnp.abs(disc - disc_ref)))
    assert jnp.allclose(hidden, hidden_ref, atol=5e-2, rtol=5e-2), \
        float(jnp.max(jnp.abs(hidden - hidden_ref)))

    # 2) bf16 x in / bf16 hidden out (review's byte-reduction path; the cast here
    #    stands in for a producer that already emits bf16).
    disc_b, hidden_b = jax.block_until_ready(
        discriminator_forward(x.astype(jnp.bfloat16), params,
                              hidden_dtype=jnp.bfloat16))
    assert hidden_b.dtype == jnp.bfloat16
    assert jnp.allclose(disc_b, disc_ref, atol=5e-2), \
        float(jnp.max(jnp.abs(disc_b - disc_ref)))
    assert jnp.allclose(hidden_b.astype(jnp.float32), hidden_ref, atol=2e-1, rtol=2e-1), \
        float(jnp.max(jnp.abs(hidden_b.astype(jnp.float32) - hidden_ref)))

    print("KERNEL_OK")
</pallas_src>

<mosaic_0001>
module attributes {stable_mosaic.version = 11 : i64} {
  func.func @_discriminator_kernel(%arg0: i32, %arg1: memref<64x256xf32, #tpu.memory_space<vmem>>, %arg2: memref<256x128xbf16, #tpu.memory_space<vmem>>, %arg3: memref<1x128xf32, #tpu.memory_space<vmem>>, %arg4: memref<128x128xbf16, #tpu.memory_space<vmem>>, %arg5: memref<1x128xf32, #tpu.memory_space<vmem>>, %arg6: memref<128x256xbf16, #tpu.memory_space<vmem>>, %arg7: memref<1x256xf32, #tpu.memory_space<vmem>>, %arg8: memref<1x128xf32, #tpu.memory_space<vmem>>, %arg9: memref<1xf32, #tpu.memory_space<smem>>, %arg10: memref<64x1xf32, #tpu.memory_space<vmem>>, %arg11: memref<64x256xf32, #tpu.memory_space<vmem>>) attributes {dimension_semantics = [#tpu.dimension_semantics<parallel>], iteration_bounds = array<i64: 4>, scalar_prefetch = 0 : i64, scratch_operands = 0 : i64, tpu.core_type = #tpu.core_type<tc>, window_params = [{transform_indices = @transform_0, window_bounds = array<i64: 64, 256>}, {pipeline_mode = #tpu.pipeline_mode<synchronous>, transform_indices = @transform_1, window_bounds = array<i64: 256, 128>}, {pipeline_mode = #tpu.pipeline_mode<synchronous>, transform_indices = @transform_2, window_bounds = array<i64: 1, 128>}, {pipeline_mode = #tpu.pipeline_mode<synchronous>, transform_indices = @transform_3, window_bounds = array<i64: 128, 128>}, {pipeline_mode = #tpu.pipeline_mode<synchronous>, transform_indices = @transform_4, window_bounds = array<i64: 1, 128>}, {pipeline_mode = #tpu.pipeline_mode<synchronous>, transform_indices = @transform_5, window_bounds = array<i64: 128, 256>}, {pipeline_mode = #tpu.pipeline_mode<synchronous>, transform_indices = @transform_6, window_bounds = array<i64: 1, 256>}, {pipeline_mode = #tpu.pipeline_mode<synchronous>, transform_indices = @transform_7, window_bounds = array<i64: 1, 128>}, {transform_indices = @transform_8, window_bounds = array<i64: 1>}, {transform_indices = @transform_9, window_bounds = array<i64: 64, 1>}, {transform_indices = @transform_10, window_bounds = array<i64: 64, 256>}]} {
    %c0 = arith.constant 0 : index
    %c0_0 = arith.constant 0 : index
    %0 = vector.load %arg1[%c0, %c0_0] : memref<64x256xf32, #tpu.memory_space<vmem>>, vector<64x256xf32>
    %1 = arith.truncf %0 : vector<64x256xf32> to vector<64x256xbf16>
    %c0_1 = arith.constant 0 : index
    %c0_2 = arith.constant 0 : index
    %2 = vector.load %arg2[%c0_1, %c0_2] : memref<256x128xbf16, #tpu.memory_space<vmem>>, vector<256x128xbf16>
    %cst = arith.constant dense<0.000000e+00> : vector<64x128xf32>
    %3 = tpu.matmul %1, %2, %cst {dimension_numbers = #tpu.dot_dimension_numbers<[1], [0], [0], [1], [0, 0, 1, 1], [], []>} : vector<64x256xbf16>, vector<256x128xbf16>, vector<64x128xf32> -> vector<64x128xf32>
    %c0_3 = arith.constant 0 : index
    %c0_4 = arith.constant 0 : index
    %4 = vector.load %arg3[%c0_3, %c0_4] : memref<1x128xf32, #tpu.memory_space<vmem>>, vector<1x128xf32>
    %5 = vector.broadcast %4 : vector<1x128xf32> to vector<64x128xf32>
    %6 = arith.addf %3, %5 : vector<64x128xf32>
    %cst_5 = arith.constant 0.000000e+00 : f32
    %7 = vector.broadcast %cst_5 : f32 to vector<64x128xf32>
    %8 = arith.cmpf ogt, %6, %7 : vector<64x128xf32>
    %cst_6 = arith.constant 0.00999999977 : f32
    %9 = vector.broadcast %cst_6 : f32 to vector<64x128xf32>
    %10 = arith.mulf %9, %6 : vector<64x128xf32>
    %11 = arith.select %8, %6, %10 : vector<64x128xi1>, vector<64x128xf32>
    %12 = arith.truncf %11 : vector<64x128xf32> to vector<64x128xbf16>
    %c0_7 = arith.constant 0 : index
    %c0_8 = arith.constant 0 : index
    %13 = vector.load %arg4[%c0_7, %c0_8] : memref<128x128xbf16, #tpu.memory_space<vmem>>, vector<128x128xbf16>
    %cst_9 = arith.constant dense<0.000000e+00> : vector<64x128xf32>
    %14 = tpu.matmul %12, %13, %cst_9 {dimension_numbers = #tpu.dot_dimension_numbers<[1], [0], [0], [1], [0, 0, 1, 1], [], []>} : vector<64x128xbf16>, vector<128x128xbf16>, vector<64x128xf32> -> vector<64x128xf32>
    %c0_10 = arith.constant 0 : index
    %c0_11 = arith.constant 0 : index
    %15 = vector.load %arg5[%c0_10, %c0_11] : memref<1x128xf32, #tpu.memory_space<vmem>>, vector<1x128xf32>
    %16 = vector.broadcast %15 : vector<1x128xf32> to vector<64x128xf32>
    %17 = arith.addf %14, %16 : vector<64x128xf32>
    %cst_12 = arith.constant 0.000000e+00 : f32
    %18 = vector.broadcast %cst_12 : f32 to vector<64x128xf32>
    %19 = arith.cmpf ogt, %17, %18 : vector<64x128xf32>
    %cst_13 = arith.constant 0.00999999977 : f32
    %20 = vector.broadcast %cst_13 : f32 to vector<64x128xf32>
    %21 = arith.mulf %20, %17 : vector<64x128xf32>
    %22 = arith.select %19, %17, %21 : vector<64x128xi1>, vector<64x128xf32>
    %c0_14 = arith.constant 0 : index
    %c0_15 = arith.constant 0 : index
    %23 = vector.load %arg8[%c0_14, %c0_15] : memref<1x128xf32, #tpu.memory_space<vmem>>, vector<1x128xf32>
    %24 = vector.broadcast %23 : vector<1x128xf32> to vector<64x128xf32>
    %25 = arith.mulf %22, %24 : vector<64x128xf32>
    %cst_16 = arith.constant dense<0.000000e+00> : vector<64xf32>
    %26 = vector.multi_reduction <add>, %25, %cst_16 [1] : vector<64x128xf32> to vector<64xf32>
    %27 = vector.shape_cast %26 : vector<64xf32> to vector<64x1xf32>
    %c0_17 = arith.constant 0 : index
    %28 = memref.load %arg9[%c0_17] : memref<1xf32, #tpu.memory_space<smem>>
    %29 = vector.broadcast %28 : f32 to vector<64x1xf32>
    %30 = arith.addf %27, %29 : vector<64x1xf32>
    %31 = arith.negf %30 : vector<64x1xf32>
    %32 = math.exp %31 : vector<64x1xf32>
    %cst_18 = arith.constant 1.000000e+00 : f32
    %33 = vector.broadcast %cst_18 : f32 to vector<64x1xf32>
    %34 = arith.addf %33, %32 : vector<64x1xf32>
    %35 = arith.divf %33, %34 : vector<64x1xf32>
    %c0_19 = arith.constant 0 : index
    %c0_20 = arith.constant 0 : index
    %36 = vector.load %arg10[%c0_19, %c0_20] : memref<64x1xf32, #tpu.memory_space<vmem>>, vector<64x1xf32>
    tpu.vector_store %arg10[%c0_19, %c0_20], %35 {strides = array<i32>} : memref<64x1xf32, #tpu.memory_space<vmem>>, vector<64x1xf32>,
    %37 = arith.truncf %22 : vector<64x128xf32> to vector<64x128xbf16>
    %c0_21 = arith.constant 0 : index
    %c0_22 = arith.constant 0 : index
    %38 = vector.load %arg6[%c0_21, %c0_22] : memref<128x256xbf16, #tpu.memory_space<vmem>>, vector<128x256xbf16>
    %cst_23 = arith.constant dense<0.000000e+00> : vector<64x256xf32>
    %39 = tpu.matmul %37, %38, %cst_23 {dimension_numbers = #tpu.dot_dimension_numbers<[1], [0], [0], [1], [0, 0, 1, 1], [], []>} : vector<64x128xbf16>, vector<128x256xbf16>, vector<64x256xf32> -> vector<64x256xf32>
    %c0_24 = arith.constant 0 : index
    %c0_25 = arith.constant 0 : index
    %40 = vector.load %arg7[%c0_24, %c0_25] : memref<1x256xf32, #tpu.memory_space<vmem>>, vector<1x256xf32>
    %41 = vector.broadcast %40 : vector<1x256xf32> to vector<64x256xf32>
    %42 = arith.addf %39, %41 : vector<64x256xf32>
    %c0_26 = arith.constant 0 : index
    %c0_27 = arith.constant 0 : index
    %43 = vector.load %arg11[%c0_26, %c0_27] : memref<64x256xf32, #tpu.memory_space<vmem>>, vector<64x256xf32>
    tpu.vector_store %arg11[%c0_26, %c0_27], %42 {strides = array<i32>} : memref<64x256xf32, #tpu.memory_space<vmem>>, vector<64x256xf32>,
    return
  }
  func.func @transform_0(%arg0: i32) -> (i32, i32) {
    %c0_i32 = arith.constant 0 : i32
    %c0_i32_0 = arith.constant 0 : i32
    return %arg0, %c0_i32 : i32, i32
  }
  func.func @transform_1(%arg0: i32) -> (i32, i32) {
    %c0_i32 = arith.constant 0 : i32
    %c0_i32_0 = arith.constant 0 : i32
    %c0_i32_1 = arith.constant 0 : i32
    return %c0_i32, %c0_i32_0 : i32, i32
  }
  func.func @transform_2(%arg0: i32) -> (i32, i32) {
    %c0_i32 = arith.constant 0 : i32
    %c0_i32_0 = arith.constant 0 : i32
    %c0_i32_1 = arith.constant 0 : i32
    return %c0_i32, %c0_i32_0 : i32, i32
  }
  func.func @transform_3(%arg0: i32) -> (i32, i32) {
    %c0_i32 = arith.constant 0 : i32
    %c0_i32_0 = arith.constant 0 : i32
    %c0_i32_1 = arith.constant 0 : i32
    return %c0_i32, %c0_i32_0 : i32, i32
  }
  func.func @transform_4(%arg0: i32) -> (i32, i32) {
    %c0_i32 = arith.constant 0 : i32
    %c0_i32_0 = arith.constant 0 : i32
    %c0_i32_1 = arith.constant 0 : i32
    return %c0_i32, %c0_i32_0 : i32, i32
  }
  func.func @transform_5(%arg0: i32) -> (i32, i32) {
    %c0_i32 = arith.constant 0 : i32
    %c0_i32_0 = arith.constant 0 : i32
    %c0_i32_1 = arith.constant 0 : i32
    return %c0_i32, %c0_i32_0 : i32, i32
  }
  func.func @transform_6(%arg0: i32) -> (i32, i32) {
    %c0_i32 = arith.constant 0 : i32
    %c0_i32_0 = arith.constant 0 : i32
    %c0_i32_1 = arith.constant 0 : i32
    return %c0_i32, %c0_i32_0 : i32, i32
  }
  func.func @transform_7(%arg0: i32) -> (i32, i32) {
    %c0_i32 = arith.constant 0 : i32
    %c0_i32_0 = arith.constant 0 : i32
    %c0_i32_1 = arith.constant 0 : i32
    return %c0_i32, %c0_i32_0 : i32, i32
  }
  func.func @transform_8(%arg0: i32) -> i32 {
    %c0_i32 = arith.constant 0 : i32
    %c0_i32_0 = arith.constant 0 : i32
    return %c0_i32 : i32
  }
  func.func @transform_9(%arg0: i32) -> (i32, i32) {
    %c0_i32 = arith.constant 0 : i32
    %c0_i32_0 = arith.constant 0 : i32
    return %arg0, %c0_i32 : i32, i32
  }
  func.func @transform_10(%arg0: i32) -> (i32, i32) {
    %c0_i32 = arith.constant 0 : i32
    %c0_i32_0 = arith.constant 0 : i32
    return %arg0, %c0_i32 : i32, i32
  }
}

</mosaic_0001>

<bundles_post_ra>
// kernel: tpu_custom_call.1
= control target key start
LH: loop header
LB: loop body
LE: loop exit
PB: predicated region body
PF: predicated region fallthrough
CT: control target
= control target key end

     0   :  { %s2222_s0 = inlined_call_operand.hbm [shape: f32[256,256], index: 0, kind: input, shape index: {}]   ;;  %s2223_s1 = inlined_call_operand.hbm [shape: bf16[256,128], index: 1, kind: input, shape index: {}]   ;;  %s2224_s2 = inlined_call_operand.vmem [shape: f32[1,128], index: 2, kind: input, shape index: {}]   ;;  %s2225_s3 = inlined_call_operand.hbm [shape: bf16[128,128], index: 3, kind: input, shape index: {}]   ;;  %s2226_s4 = inlined_call_operand.vmem [shape: f32[1,128], index: 4, kind: input, shape index: {}]   ;;  %s2227_s5 = inlined_call_operand.hbm [shape: bf16[128,256], index: 5, kind: input, shape index: {}]   ;;  %s2228_s6 = inlined_call_operand.vmem [shape: f32[1,256], index: 6, kind: input, shape index: {}]   ;;  %s2229_s7 = inlined_call_operand.vmem [shape: f32[1,128], index: 7, kind: input, shape index: {}]   ;;  %s2230_s8 = inlined_call_operand.<no memory space> [shape: f32[1], index: 8, kind: input, shape index: {}]   ;;  %s2231_s9 = inlined_call_operand.vmem [shape: f32[256,1], index: 9, kind: output, shape index: {0}]   ;;  %s2232_s10 = inlined_call_operand.hbm [shape: f32[256,256], index: 10, kind: output, shape index: {1}]  }
   0x1   :  { %2239 = sst [smem:[#allocation18_spill]] %s2232_s10 }
   0x2   :  { %16 = sst [smem:[#allocation2]] %s2230_s8 }
   0x3   :  { %17 = vsyncpa [#allocation4], 0 }
   0x4   :  { %19 = vsyncpa [#allocation4 + $0x1], 0 }
   0x5   :  { %20 = vsyncpa [#allocation7], 0 }
   0x6   :  { %21 = vsyncpa [#allocation10], 0 }
   0x7   :  { %22 = vsyncpa [#allocation5], 0 }
   0x8   :  { %24 = vsyncpa [#allocation5 + $0x1], 0  ;;  %s1886_s15 = smov 0   ;;  %s1888_s16 = smov 0  }
   0x9   :  { %s1890_s17 = smov 0   ;;  %s1892_s18 = smov 0  }
   0xa LB: > { %2240 = sst [smem:[#allocation16_spill]] %s1800_s15  ;;  %s1907_s8 = sadd.s32 4294967295, %s1812_s18   ;;  %s1812_s18 = sphi %s1892_s18, %s2263_s18   ;;  %s1808_s17 = sphi %s1890_s17, %s2262_s17   ;;  %s1804_s16 = sphi %s1888_s16, %s2261_s16   ;;  %s1800_s15 = sphi %s1886_s15, %s2260_s15  }
   0xb   : > { %s1303_s19 = sadd.s32 4294967294, %s1812_s18   ;;  %p50_p0 = scmp.ne.s32.totalorder %s1804_s16, %s1800_s15 }
   0xc   : > { %p2233_p1 = scmp.eq.s32.totalorder %s1907_s8, 0  ;;  %p274_p3 = scmp.eq.s32.totalorder %s1303_s19, 3 }
   0xd   : > { %p1304_p5 = scmp.ge.s32.totalorder %s1812_s18, 1  ;;  %p281_p7 = scmp.lt.s32.totalorder %s1812_s18, 5 }
   0xe   : > { %p1916_p4 = por %p2233_p1, %p50_p0  ;;  %p1921_p6 = por %p274_p3, %p50_p0 }
   0xf   : > { %p1926_p8 = pnand %p1304_p5, %p281_p7  ;;  %s1814_s23 = smov [#allocation6]  }
  0x10   : > { %s2241_s20 = scalar_select %p1916_p4, 1, 0 }
  0x11   : > { %s2242_s21 = scalar_select %p1921_p6, 1, 0 }
  0x12   : > { %s2244_s22 = scalar_select %p1926_p8, 1, 0 }
  0x13   : > { %2243 = sst [smem:[#allocation17_spill]] %s2242_s21  ;;  %s293_s24 = sshll.u32 %s1814_s23, 4  ;;  %s1930_s24 = int_to_ptr.vmem [resolvable:$true] %s293_s24 }
  0x14   : > { %p1474_p9 = pneg %p1926_p8  ;;  %s1815_s26 = smov [#allocation8]  }
  0x15   : > { %s309_s27 = sshll.u32 %s1815_s26, 4  ;;  %s1816_s28 = smov [#allocation9]   ;;  %s1940_s27 = int_to_ptr.vmem [resolvable:$true] %s309_s27 }
  0x16   : > { %p1936_p10 = pnand %p1474_p9, %p2233_p1  ;;  %s1942_s29 = sshll.u32 %s1816_s28, 4  ;;  %s326_s29 = int_to_ptr.vmem [resolvable:$true] %s1942_s29 }
  0x17   : > { %s1624_s12 = scalar_lea.hbm %s2223_s1, 2048 }
  0x18   : > { %p1625_p11 = scmp.ne.s32.totalorder %s2223_s1, %s1624_s12  ;;  %p1952_p12 = pneg %p1936_p10 }
  0x19   : > { %p1631_p3 = scmp.lt.u32.totalorder %s1624_s12, %s2223_s1 }
  0x1a   : > { %p1627_p13 = pnand %p1952_p12, %p1625_p11 }
  0x1c   : > { %p1628_p0 = pneg %p1627_p13 }
  0x1e   : > { %p1633_p5 = pnand %p1631_p3, %p1628_p0 }
  0x20   : > { %1636 = shalt.err (!%p1633_p5)
}
  0x21   : > { %s1637_s28 = scalar_lea.vmem %s1930_s24, 2048  ;;  %p1645_p2 = scmp.lt.s32.totalorder %s1930_s24, %s1930_s24 }
  0x22   : > { %p1638_p7 = scmp.ne.s32.totalorder %s1930_s24, %s1637_s28  ;;  %p1646_p6 = scmp.lt.s32.totalorder %s1637_s28, %s1637_s28 }
  0x24   : > { %p1640_p9 = pnand %p1638_p7, %p1952_p12  ;;  %p1647_p11 = por %p1646_p6, %p1645_p2 }
  0x26   : > { %p1641_p1 = pneg %p1640_p9 }
  0x28   : > { %p1648_p13 = pnand %p1647_p11, %p1641_p1 }
  0x2a   : > { %1651 = shalt.err (!%p1648_p13)
}
  0x2b   : > { %s1817_s30 = smov 64   ;;  %s1818_s11 = smov 4  }
  0x2c   : > { %1477 = dma.hbm_to_vmem [thread:$0]  (!%p1936_p10), %s2223_s1, 2048, %s1930_s24, [#allocation7], %s1817_s30, %s1817_s30, %s1818_s11  }
  0x2d   : > { %s1652_s26 = scalar_lea.hbm %s2225_s3, 1024 }
  0x2e   : > { %p1653_p2 = scmp.ne.s32.totalorder %s2225_s3, %s1652_s26  ;;  %p1659_p0 = scmp.lt.u32.totalorder %s1652_s26, %s2225_s3 }
  0x30   : > { %p1655_p1 = pnand %p1653_p2, %p1952_p12 }
  0x32   : > { %p1656_p6 = pneg %p1655_p1 }
  0x34   : > { %p1661_p3 = pnand %p1659_p0, %p1656_p6 }
  0x36   : > { %1664 = shalt.err (!%p1661_p3)
}
  0x37   : > { %s1665_s24 = scalar_lea.vmem %s1940_s27, 1024  ;;  %p1673_p11 = scmp.lt.s32.totalorder %s1940_s27, %s1940_s27 }
  0x38   : > { %p1666_p5 = scmp.ne.s32.totalorder %s1940_s27, %s1665_s24  ;;  %p1674_p13 = scmp.lt.s32.totalorder %s1665_s24, %s1665_s24 }
  0x3a   : > { %p1668_p7 = pnand %p1666_p5, %p1952_p12  ;;  %p1675_p2 = por %p1674_p13, %p1673_p11 }
  0x3c   : > { %p1669_p9 = pneg %p1668_p7 }
  0x3e   : > { %p1676_p1 = pnand %p1675_p2, %p1669_p9 }
  0x40   : > { %1679 = shalt.err (!%p1676_p1)
}
  0x41   : > { %1480 = dma.hbm_to_vmem [thread:$0]  (!%p1936_p10), %s2225_s3, 1024, %s1940_s27, [#allocation7], %s1817_s30, %s1817_s30, %s1818_s11  }
  0x42   : > { %s1680_s13 = scalar_lea.hbm %s2227_s5, 2048 }
  0x43   : > { %p1681_p6 = scmp.ne.s32.totalorder %s2227_s5, %s1680_s13  ;;  %p1687_p5 = scmp.lt.u32.totalorder %s1680_s13, %s2227_s5 }
  0x45   : > { %p1683_p0 = pnand %p1681_p6, %p1952_p12 }
  0x47   : > { %p1684_p3 = pneg %p1683_p0 }
  0x49   : > { %p1689_p7 = pnand %p1687_p5, %p1684_p3 }
  0x4b   : > { %1692 = shalt.err (!%p1689_p7)
}
  0x4c   : > { %s1693_s24 = scalar_lea.vmem %s326_s29, 2048  ;;  %p1701_p2 = scmp.lt.s32.totalorder %s326_s29, %s326_s29 }
  0x4d   : > { %p1694_p9 = scmp.ne.s32.totalorder %s326_s29, %s1693_s24  ;;  %p1702_p1 = scmp.lt.s32.totalorder %s1693_s24, %s1693_s24 }
  0x4f   : > { %p1696_p11 = pnand %p1694_p9, %p1952_p12  ;;  %p1703_p4 = por %p1702_p1, %p1701_p2 }
  0x51   : > { %p1697_p13 = pneg %p1696_p11 }
  0x53   : > { %p1704_p8 = pnand %p1703_p4, %p1697_p13 }
  0x55   : > { %1707 = shalt.err (!%p1704_p8)
}
  0x56   : > { %s1819_s27 = smov 128   ;;  %s1820_s19 = smov 8  }
  0x57   : > { %1483 = dma.hbm_to_vmem [thread:$0]  (!%p1936_p10), %s2227_s5, 2048, %s326_s29, [#allocation10], %s1819_s27, %s1819_s27, %s1820_s19  }
  0x58   : > { %s2016_s10 = sadd.s32 1, %s1812_s18   ;;  %s37_s21 = sadd.s32 1, %s1808_s17 }
  0x59   : > { %s34_s15 = ssub.s32 %s1812_s18, %s2016_s10  ;;  %p44_p8 = scmp.ne.s32.totalorder %s1808_s17, %s1804_s16 }
  0x5a   : > { %p35_p4 = scmp.eq.s32.totalorder %s34_s15, 0  ;;  %p45_p12 = scmp.eq.s32.totalorder %s1812_s18, 0 }
  0x5b   : > { %p1495_p6 = scmp.lt.s32.totalorder %s1812_s18, 4  ;;  %p2247_p3 = scmp.eq.s32.totalorder %s1907_s8, 3 }
  0x5c   : > { %s2026_s12 = scalar_select %p35_p4, %s1808_s17, %s37_s21  }
  0x5d   : > { %p46_p0 = por %p45_p12, %p44_p8  ;;  %p2030_p5 = por %p2247_p3, %p44_p8 }
  0x5e   : > { %s348_s25 = sand.u32 1, %s1808_s17   ;;  %s1379_s14 = sshll.u32 %s1812_s18, 11 }
  0x5f   : > { %s1309_s29 = sshll.u32 %s348_s25, 7  ;;  %s2039_s28 = scalar_lea.hbm %s2222_s0, %s1379_s14 }
  0x60   : > { %s352_s24 = scalar_lea.vmem [#allocation3], %s1309_s29  ;;  %p2041_p10 = pnand %p1495_p6, %p46_p0 }
  0x61   : > { %s360_s27 = sshll.u32 %s352_s24, 4  ;;  %s2047_s30 = scalar_lea.sflag [#allocation4], %s348_s25  ;;  %s2045_s27 = int_to_ptr.vmem [resolvable:$true] %s360_s27 }
  0x62   : > { %s1708_s11 = scalar_lea.hbm %s2039_s28, 2048  ;;  %p1710_p9 = pneg %p2041_p10 }
  0x63   : > { %p1709_p7 = scmp.ne.s32.totalorder %s2039_s28, %s1708_s11  ;;  %s1713_s14 = scalar_lea.hbm %s2222_s0, 8192 }
  0x64   : > { %p1714_p2 = scmp.lt.u32.totalorder %s2039_s28, %s2222_s0  ;;  %p1715_p1 = scmp.lt.u32.totalorder %s1713_s14, %s1708_s11 }
  0x65   : > { %p1711_p11 = pnand %p1710_p9, %p1709_p7  ;;  %p1717_p8 = scmp.lt.u32.totalorder %s1708_s11, %s2039_s28 }
  0x66   : > { %p1716_p4 = por %p1715_p1, %p1714_p2 }
  0x67   : > { %p1712_p13 = pneg %p1711_p11 }
  0x68   : > { %p1718_p12 = por %p1717_p8, %p1716_p4 }
  0x6a   : > { %p1719_p6 = pnand %p1718_p12, %p1712_p13 }
  0x6c   : > { %1722 = shalt.err (!%p1719_p6)
}
  0x6d   : > { %s1723_s25 = scalar_lea.vmem %s2045_s27, 2048  ;;  %s1821_s26 = smov [#allocation3]  }
  0x6e   : > { %p1724_p0 = scmp.ne.s32.totalorder %s2045_s27, %s1723_s25  ;;  %s1728_s24 = sshll.u32 %s1821_s26, 4  ;;  %s1729_s24 = int_to_ptr.vmem [resolvable:$false] %s1728_s24 }
  0x6f   : > { %s1730_s15 = scalar_lea.vmem %s1729_s24, 4096  ;;  %p1731_p11 = scmp.lt.s32.totalorder %s2045_s27, %s1729_s24 }
  0x70   : > { %p1726_p3 = pnand %p1724_p0, %p1710_p9  ;;  %p1732_p2 = scmp.lt.s32.totalorder %s1730_s15, %s1723_s25 }
  0x72   : > { %p1727_p7 = pneg %p1726_p3  ;;  %p1733_p1 = por %p1732_p2, %p1731_p11 }
  0x74   : > { %p1734_p4 = pnand %p1733_p1, %p1727_p7 }
  0x76   : > { %1737 = shalt.err (!%p1734_p4)
}
  0x77   : > { %s1822_s11 = smov 256   ;;  %s1823_s21 = smov 16  }
  0x78   : > { %1487 = dma.hbm_to_vmem [thread:$0]  (!%p2041_p10), %s2039_s28, 2048, %s2045_s27, %s2047_s30, %s1822_s11, %s1822_s11, %s1823_s21  }
  0x79   : > { %p2250_p9 = scmp.ne.s32.totalorder %s2244_s22, 0 }
  0x7a   : > { %s2078_s14 = sand.u32 (!%p2250_p9), 1, %s1804_s16   ;;  %p2251_p13 = scmp.ne.s32.totalorder (!%p2250_p9), %s2241_s20, 0 }
  0x7b   : > { %372 = sbr.rel (%p2250_p9) target bundleno = 881 (0x371), region = 56  ;;  %s1314_s29 = sshll.u32 (!%p2250_p9), %s2078_s14, 7 }
  0x7c   : > { %s375_s23 = scalar_lea.sflag (!%p2250_p9), [#allocation4], %s2078_s14  ;;  %s2084_s25 = scalar_lea.vmem (!%p2250_p9), [#allocation3], %s1314_s29 }
  0x82   : > { %1783 = dma.done.wait (%p2251_p13), %s375_s23, 2048  }
  0x83   : > { %1785 = vsyncadd (%p2251_p13), %s375_s23, 4294965248  ;;  %p2252_p10 = scmp.eq.s32.totalorder %s1907_s8, 0 }
  0x85   : > { %1787 = dma.done.wait (%p2252_p10), [#allocation7], 3072   ;;  %p2253_p8 = pmov %p2252_p10 }
  0x87   : > { %1789 = vsyncadd (%p2253_p8), [#allocation7], 4294964224  ;;  %p2254_p12 = pmov %p2253_p8 }
  0x88   : > { %p2255_p6 = pmov %p2253_p8 }
  0x89   : > { %1791 = dma.done.wait (%p2254_p12), [#allocation10], 2048  }
  0x8a   : > { %1793 = vsyncadd (%p2255_p6), [#allocation10], 4294965248  ;;  %v1544_v0 = vld [vmem:[#allocation6 + $0x40] sm:$0xff]   ;;  %v1546_v2 = vld [vmem:[#allocation6 + $0x48] sm:$0xff]   ;;  %s884_s26 = sld [smem:[#allocation2]]  ;;  %s1319_s24 = sshll.u32 %s1907_s8, 3 }
  0x8b   : > { %v1545_v1 = vld [vmem:[#allocation6] sm:$0xff]   ;;  %1382 = vmatprep.subr.bf16.mxu1 %v1544_v0  ;;  %v1547_v3 = vld [vmem:[#allocation6 + $0x8] sm:$0xff]   ;;  %v1548_v4 = vld [vmem:[#allocation6 + $0x50] sm:$0xff]   ;;  %p434_p0 = scmp.lt.s32.totalorder %s1319_s24, 31  ;;  %s2154_s22 = scalar_lea.vmem [#allocation11], %s1314_s29 }
  0x8c   : > { %1383 = vmatpush3.bf16.msra.mxu1 %v1545_v1  ;;  %v1549_v5 = vld [vmem:[#allocation6 + $0x10] sm:$0xff]   ;;  %v1550_v6 = vld [vmem:[#allocation6 + $0x58] sm:$0xff]   ;;  %v1552_v8 = vld [vmem:[#allocation6 + $0x60] sm:$0xff]   ;;  %s1381_s29 = sshll.u32 %s1907_s8, 11  ;;  %s1176_s28 = sshll.u32 %s2154_s22, 4  ;;  %s2176_s28 = int_to_ptr.vmem [resolvable:$true] %s1176_s28 }
  0x8d   : > { %1384 = vmatprep.subr.bf16.mxu1 %v1546_v2  ;;  %v1551_v7 = vld [vmem:[#allocation6 + $0x18] sm:$0xff]   ;;  %v1553_v9 = vld [vmem:[#allocation6 + $0x20] sm:$0xff]   ;;  %v1554_v10 = vld [vmem:[#allocation6 + $0x68] sm:$0xff]   ;;  %s2265_s24 = smov (!%p434_p0, %s1319_s24), 31  ;;  %s2256_s30 = sld [smem:[#allocation18_spill]] }
  0x8e   : > { %v442_v11 = vld [vmem:[%s2084_s25 + $0x8] sm:$0xff]  ;;  %v444_v12 = vld [vmem:[%s2084_s25 + $0x18] sm:$0xff]  ;;  %v1556_v15 = vld [vmem:[#allocation6 + $0x70] sm:$0xff]   ;;  %s1320_s15 = sshll.u32 %s2265_s24, 3  ;;  %s1158_s8 = scalar_lea.sflag [#allocation5], %s2078_s14 }
  0x8f   : > { %v458_v13 = vpack.c.bf16 %v444_v12, %v442_v11  ;;  %v1555_v14 = vld [vmem:[#allocation6 + $0x28] sm:$0xff]   ;;  %v1557_v16 = vld [vmem:[#allocation6 + $0x30] sm:$0xff]   ;;  %v1558_v17 = vld [vmem:[#allocation6 + $0x78] sm:$0xff]   ;;  %s2131_s23 = scalar_lea.vmem %s2231_s9, %s1320_s15  ;;  %s1738_s24 = scalar_lea.vmem %s2176_s28, 2048 }
  0x90   : > { %1385 = vmatpush3.bf16.msra.mxu1 %v1547_v3  ;;  %v1559_v18 = vld [vmem:[#allocation6 + $0x38] sm:$0xff]   ;;  %v441_v19 = vld [vmem:[%s2084_s25] sm:$0xff]  ;;  %v443_v20 = vld [vmem:[%s2084_s25 + $0x10] sm:$0xff]  ;;  %p1739_p3 = scmp.ne.s32.totalorder %s2176_s28, %s1738_s24  ;;  %s1825_s15 = smov [#allocation11]  }
  0x91   : > { %1386 = vmatprep.subr.bf16.mxu1 %v1548_v4  ;;  %632 = vmatprep.mubr.bf16.mxu1 %v458_v13  ;;  %v446_v21 = vld [vmem:[%s2084_s25 + $0x28] sm:$0xff]  ;;  %v448_v22 = vld [vmem:[%s2084_s25 + $0x38] sm:$0xff]  ;;  %v1560_v23 = vld [vmem:[#allocation8] sm:$0xff]   ;;  %v457_v24 = vpack.c.bf16 %v443_v20, %v441_v19  ;;  %s1742_s11 = sshll.u32 %s1825_s15, 4  ;;  %s1743_s11 = int_to_ptr.vmem [resolvable:$false] %s1742_s11 }
  0x92   : > { %v1561_v25 = vld [vmem:[#allocation8 + $0x8] sm:$0xff]   ;;  %v460_v26 = vpack.c.bf16 %v448_v22, %v446_v21  ;;  %v445_v27 = vld [vmem:[%s2084_s25 + $0x20] sm:$0xff]  ;;  %v447_v28 = vld [vmem:[%s2084_s25 + $0x30] sm:$0xff]  ;;  %p1740_p7 = pnand %p1739_p3, %p2030_p5  ;;  %s1744_s21 = scalar_lea.vmem %s1743_s11, 4096 }
  0x93   : > { %v450_v29 = vld [vmem:[%s2084_s25 + $0x48] sm:$0xff]  ;;  %v452_v30 = vld [vmem:[%s2084_s25 + $0x58] sm:$0xff]  ;;  %v1562_v31 = vld [vmem:[#allocation8 + $0x10] sm:$0xff]   ;;  %v459_v32 = vpack.c.bf16 %v447_v28, %v445_v27  ;;  %p1745_p2 = scmp.lt.s32.totalorder %s2176_s28, %s1743_s11  ;;  %p1746_p1 = scmp.lt.s32.totalorder %s1744_s21, %s1738_s24 }
  0x94   : > { %1387 = vmatpush3.bf16.msra.mxu1 %v1549_v5  ;;  %v462_v33 = vpack.c.bf16 %v452_v30, %v450_v29  ;;  %v449_v34 = vld [vmem:[%s2084_s25 + $0x40] sm:$0xff]  ;;  %v451_v35 = vld [vmem:[%s2084_s25 + $0x50] sm:$0xff]  ;;  %v454_v36 = vld [vmem:[%s2084_s25 + $0x68] sm:$0xff]  ;;  %p1741_p11 = pneg %p1740_p7 }
  0x95   : > { %1388 = vmatprep.subr.bf16.mxu1 %v1550_v6  ;;  %v456_v37 = vld [vmem:[%s2084_s25 + $0x78] sm:$0xff]  ;;  %v461_v38 = vpack.c.bf16 %v451_v35, %v449_v34  ;;  %v453_v40 = vld [vmem:[%s2084_s25 + $0x60] sm:$0xff]  ;;  %v455_v41 = vld [vmem:[%s2084_s25 + $0x70] sm:$0xff]  ;;  %p1747_p4 = por %p1746_p1, %p1745_p2 }
  0x96   : > { %v464_v39 = vpack.c.bf16 %v456_v37, %v454_v36  ;;  %v463_v42 = vpack.c.bf16 %v455_v41, %v453_v40  ;;  %v1563_v43 = vld [vmem:[#allocation8 + $0x18] sm:$0xff]   ;;  %v1564_v44 = vld [vmem:[#allocation8 + $0x20] sm:$0xff]   ;;  %v1565_v45 = vld [vmem:[#allocation8 + $0x28] sm:$0xff]  }
  0x97   : > { %v1566_v46 = vld [vmem:[#allocation8 + $0x30] sm:$0xff]   ;;  %v1567_v47 = vld [vmem:[#allocation8 + $0x38] sm:$0xff]   ;;  %v1568_v48 = vld [vmem:[#allocation9 + $0x4] ss:$8 sps:$4 sm:$0xff]   ;;  %p1748_p9 = pnand %p1747_p4, %p1741_p11 }
  0x98   : > { %1389 = vmatpush3.bf16.msra.mxu1 %v1551_v7  ;;  %v1570_v49 = vld [vmem:[#allocation9] ss:$8 sps:$4 sm:$0xff]   ;;  %v1571_v50 = vld [vmem:[#allocation9 + $0x14] ss:$8 sps:$4 sm:$0xff]   ;;  %1063 = vmatprep.subr.bf16.mxu0 %v1568_v48  ;;  %v1573_v51 = vld [vmem:[#allocation9 + $0x10] ss:$8 sps:$4 sm:$0xff]  }
  0x99   : > { %1390 = vmatprep.subr.bf16.mxu1 %v1552_v8  ;;  %1064 = vmatpush1.bf16.msra.mxu0 %v1570_v49  ;;  %v1574_v52 = vld [vmem:[#allocation9 + $0x24] ss:$8 sps:$4 sm:$0xff]   ;;  %v1576_v53 = vld [vmem:[#allocation9 + $0x20] ss:$8 sps:$4 sm:$0xff]   ;;  %v1577_v54 = vld [vmem:[#allocation9 + $0x34] ss:$8 sps:$4 sm:$0xff]  }
  0x9a   : > { %1065 = vmatprep.subr.bf16.mxu0 %v1571_v50  ;;  %v1579_v55 = vld [vmem:[#allocation9 + $0x30] ss:$8 sps:$4 sm:$0xff]   ;;  %v1580_v56 = vld [vmem:[#allocation9 + $0x44] ss:$8 sps:$4 sm:$0xff]   ;;  %v1582_v57 = vld [vmem:[#allocation9 + $0x40] ss:$8 sps:$4 sm:$0xff]  }
  0x9b   : > { %v1583_v58 = vld [vmem:[#allocation9 + $0x54] ss:$8 sps:$4 sm:$0xff]   ;;  %v1321_v60 = vld [vmem:[%s2224_s2] ss:$0 sm:$0xff]  ;;  %v1585_v48 = vld [vmem:[#allocation9 + $0x50] ss:$8 sps:$4 sm:$0xff]  }
  0x9c   : > { %1391 = vmatpush3.bf16.msra.mxu1 %v1553_v9  ;;  %v1586_v49 = vld [vmem:[#allocation9 + $0x64] ss:$8 sps:$4 sm:$0xff]   ;;  %v1588_v50 = vld [vmem:[#allocation9 + $0x60] ss:$8 sps:$4 sm:$0xff]  }
  0x9d   : > { %1392 = vmatprep.subr.bf16.mxu1 %v1554_v10  ;;  %1066 = vmatpush1.bf16.msra.mxu0 %v1573_v51  ;;  %v1589_v51 = vld [vmem:[#allocation9 + $0x74] ss:$8 sps:$4 sm:$0xff]  }
  0x9e   : > { %1067 = vmatprep.subr.bf16.mxu0 %v1574_v52  ;;  %v1591_v52 = vld [vmem:[#allocation9 + $0x70] ss:$8 sps:$4 sm:$0xff]  }
  0xa0   : > { %1393 = vmatpush3.bf16.msra.mxu1 %v1555_v14 }
  0xa1   : > { %1394 = vmatprep.subr.bf16.mxu1 %v1556_v15  ;;  %1068 = vmatpush1.bf16.msra.mxu0 %v1576_v53  ;;  %v1824_v53 = vmov 0  }
  0xa2   : > { %1069 = vmatprep.subr.bf16.mxu0 %v1577_v54  ;;  %1095 = vmatprep.mubr.bf16.mxu0 %v1824_v53  ;;  %v1338_v54 = vld [vmem:[%s2226_s4] ss:$0 sm:$0xff] }
  0xa4   : > { %1395 = vmatpush3.bf16.msra.mxu1 %v1557_v16 }
  0xa5   : > { %1396 = vmatprep.subr.bf16.mxu1 %v1558_v17  ;;  %1070 = vmatpush1.bf16.msra.mxu0 %v1579_v55 }
  0xa6   : > { %1071 = vmatprep.subr.bf16.mxu0 %v1580_v56 }
  0xa8   : > { %1397 = vmatpush3.bf16.msra.mxu1 %v1559_v18 }
  0xa9   : > { %1434 = vmatprep.subr.bf16.mxu1 %v1560_v23  ;;  %1072 = vmatpush1.bf16.msra.mxu0 %v1582_v57 }
  0xaa   : > { %1073 = vmatprep.subr.bf16.mxu0 %v1583_v58 }
  0xab   : > { %633 = vmatmul.mubr.bf16.vlgmr.msra.gmra.mrb[0].mxu1 %v457_v24 }
  0xac   : > { %640 = vmatprep.mubr.bf16.mxu1 %v460_v26  ;;  %1435 = vmatpush3.bf16.msra.mxu1 %v1560_v23 }
  0xad   : > { %1436 = vmatprep.subr.bf16.mxu1 %v1561_v25  ;;  %1074 = vmatpush1.bf16.msra.mxu0 %v1585_v48 }
  0xae   : > { %1075 = vmatprep.subr.bf16.mxu0 %v1586_v49 }
  0xb0   : > { %1437 = vmatpush3.bf16.msra.mxu1 %v1561_v25 }
  0xb1   : > { %1438 = vmatprep.subr.bf16.mxu1 %v1562_v31  ;;  %1076 = vmatpush1.bf16.msra.mxu0 %v1588_v50 }
  0xb2   : > { %1077 = vmatprep.subr.bf16.mxu0 %v1589_v51 }
  0xb3   : > { %641 = vmatmul.mubr.bf16.gmra.mrb[4].mxu1 %v459_v32 }
  0xb4   : > { %648 = vmatprep.mubr.bf16.mxu1 %v462_v33  ;;  %1439 = vmatpush3.bf16.msra.mxu1 %v1562_v31 }
  0xb5   : > { %1440 = vmatprep.subr.bf16.mxu1 %v1563_v43  ;;  %1078 = vmatpush1.bf16.msra.mxu0 %v1591_v52 }
  0xb8   : > { %1441 = vmatpush3.bf16.msra.mxu1 %v1563_v43 }
  0xb9   : > { %1442 = vmatprep.subr.bf16.mxu1 %v1564_v44 }
  0xbb   : > { %649 = vmatmul.mubr.bf16.gmra.mrb[8].mxu1 %v461_v38 }
  0xbc   : > { %656 = vmatprep.mubr.bf16.mxu1 %v464_v39  ;;  %1443 = vmatpush3.bf16.msra.mxu1 %v1564_v44 }
  0xbd   : > { %1444 = vmatprep.subr.bf16.mxu1 %v1565_v45 }
  0xc0   : > { %1445 = vmatpush3.bf16.msra.mxu1 %v1565_v45 }
  0xc1   : > { %1446 = vmatprep.subr.bf16.mxu1 %v1566_v46 }
  0xc3   : > { %657 = vmatmul.mubr.bf16.gmra.mrb[12].mxu1 %v463_v42 }
  0xc4   : > { %1447 = vmatpush3.bf16.msra.mxu1 %v1566_v46 }
  0xc5   : > { %1448 = vmatprep.subr.bf16.mxu1 %v1567_v47 }
  0xc8   : > { %1449 = vmatpush3.bf16.msra.mxu1 %v1567_v47 }
 0x17e   : > { %v1398_v59 = vpop.f32.mrb[0].mxu1 }
 0x17f   : > { %v1399_v61 = vpop.f32.mrb[1].mxu1 }
 0x180   : > { %v1400_v62 = vadd.f32 %v1399_v61, %v1398_v59  ;;  %v1401_v63 = vpop.f32.mrb[2].mxu1 }
 0x181   : > { %v1402_v0 = vpop.f32.mrb[3].mxu1 }
 0x182   : > { %v635_v1 = vadd.f32 %v1400_v62, %v1321_v60  ;;  %v1403_v2 = vadd.f32 %v1402_v0, %v1401_v63  ;;  %v1347_v63 = vld [vmem:[%s2229_s7] ss:$0 sm:$0xff] }
 0x184   : > { %v673_v3 = vmul.f32 0.01, %v635_v1  ;;  %v638_v4 = vadd.f32 %v1403_v2, %v1321_v60  ;;  %vm665_vm0 = vcmp.gt.f32.partialorder %v635_v1, 0.0 }
 0x186   : > { %vm666_vm1 = vcmp.gt.f32.partialorder %v638_v4, 0.0  ;;  %v674_v5 = vmul.f32 0.01, %v638_v4  ;;  %v1404_v6 = vpop.f32.mrb[4].mxu1  ;;  %v681_v10 = vsel %vm665_vm0, %v635_v1, %v673_v3  ;;  %vm942_vm0 = vcmask 7168  }
 0x187   : > { %v1405_v7 = vpop.f32.mrb[5].mxu1 }
 0x188   : > { %v1406_v8 = vadd.f32 %v1405_v7, %v1404_v6  ;;  %v1407_v9 = vpop.f32.mrb[6].mxu1  ;;  %v682_v11 = vsel %vm666_vm1, %v638_v4, %v674_v5 }
 0x189   : > { %v1408_v12 = vpop.f32.mrb[7].mxu1  ;;  %v689_v13 = vpack.c.bf16 %v682_v11, %v681_v10 }
 0x18a   : > { %v643_v14 = vadd.f32 %v1406_v8, %v1321_v60  ;;  %v1409_v15 = vadd.f32 %v1408_v12, %v1407_v9 }
 0x18b   : > { %1450 = vmatprep.mubr.bf16.mxu1 %v689_v13 }
 0x18c   : > { %v675_v16 = vmul.f32 0.01, %v643_v14  ;;  %v646_v17 = vadd.f32 %v1409_v15, %v1321_v60  ;;  %vm667_vm2 = vcmp.gt.f32.partialorder %v643_v14, 0.0 }
 0x18e   : > { %vm668_vm3 = vcmp.gt.f32.partialorder %v646_v17, 0.0  ;;  %v676_v18 = vmul.f32 0.01, %v646_v17  ;;  %v1410_v19 = vpop.f32.mrb[8].mxu1  ;;  %v683_v21 = vsel %vm667_vm2, %v643_v14, %v675_v16 }
 0x18f   : > { %v1411_v20 = vpop.f32.mrb[9].mxu1 }
 0x190   : > { %v684_v22 = vsel %vm668_vm3, %v646_v17, %v676_v18  ;;  %v1412_v23 = vadd.f32 %v1411_v20, %v1410_v19  ;;  %v1413_v24 = vpop.f32.mrb[10].mxu1 }
 0x191   : > { %v690_v25 = vpack.c.bf16 %v684_v22, %v683_v21  ;;  %v1414_v26 = vpop.f32.mrb[11].mxu1 }
 0x192   : > { %v651_v27 = vadd.f32 %v1412_v23, %v1321_v60  ;;  %v1415_v28 = vadd.f32 %v1414_v26, %v1413_v24 }
 0x193   : > { %1451 = vmatmul.mubr.bf16.vlgmr.msra.gmra.mrb[16].mxu1 %v690_v25 }
 0x194   : > { %v677_v29 = vmul.f32 0.01, %v651_v27  ;;  %v654_v30 = vadd.f32 %v1415_v28, %v1321_v60  ;;  %vm669_vm4 = vcmp.gt.f32.partialorder %v651_v27, 0.0 }
 0x196   : > { %vm670_vm5 = vcmp.gt.f32.partialorder %v654_v30, 0.0  ;;  %v678_v31 = vmul.f32 0.01, %v654_v30  ;;  %v1416_v32 = vpop.f32.mrb[12].mxu1  ;;  %v685_v36 = vsel %vm669_vm4, %v651_v27, %v677_v29 }
 0x197   : > { %v1417_v33 = vpop.f32.mrb[13].mxu1 }
 0x198   : > { %v1418_v34 = vadd.f32 %v1417_v33, %v1416_v32  ;;  %v1419_v35 = vpop.f32.mrb[14].mxu1  ;;  %v686_v37 = vsel %vm670_vm5, %v654_v30, %v678_v31 }
 0x199   : > { %v1420_v38 = vpop.f32.mrb[15].mxu1  ;;  %v691_v39 = vpack.c.bf16 %v686_v37, %v685_v36  ;;  %v885_v36 = vstv %s884_s26  ;;  %s2174_s26 = scalar_lea.hbm %s2256_s30, %s1381_s29 }
 0x19a   : > { %v659_v40 = vadd.f32 %v1418_v34, %v1321_v60  ;;  %v1421_v41 = vadd.f32 %v1420_v38, %v1419_v35 }
 0x19b   : > { %1454 = vmatprep.mubr.bf16.mxu1 %v691_v39 }
 0x19c   : > { %v679_v42 = vmul.f32 0.01, %v659_v40  ;;  %v662_v43 = vadd.f32 %v1421_v41, %v1321_v60  ;;  %vm671_vm6 = vcmp.gt.f32.partialorder %v659_v40, 0.0 }
 0x19e   : > { %vm672_vm7 = vcmp.gt.f32.partialorder %v662_v43, 0.0  ;;  %v680_v44 = vmul.f32 0.01, %v662_v43  ;;  %v687_v45 = vsel %vm671_vm6, %v659_v40, %v679_v42 }
 0x1a0   : > { %v688_v46 = vsel %vm672_vm7, %v662_v43, %v680_v44 }
 0x1a1   : > { %v692_v47 = vpack.c.bf16 %v688_v46, %v687_v45 }
 0x1a3   : > { %1455 = vmatmul.mubr.bf16.gmra.mrb[20].mxu1 %v692_v47 }
 0x266   : > { %v1452_v55 = vpop.f32.mrb[16].mxu1 }
 0x267   : > { %v807_v56 = vadd.f32 %v1452_v55, %v1338_v54  ;;  %v798_v57 = vpop.f32.mrb[17].mxu1 }
 0x268   : > { %v799_v58 = vadd.f32 %v1338_v54, %v798_v57  ;;  %v1453_v59 = vpop.f32.mrb[18].mxu1 }
 0x269   : > { %v839_v60 = vmul.f32 0.01, %v807_v56  ;;  %v810_v61 = vadd.f32 %v1453_v59, %v1338_v54  ;;  %v801_v62 = vpop.f32.mrb[19].mxu1  ;;  %vm831_vm8 = vcmp.gt.f32.partialorder %v807_v56, 0.0 }
 0x26a   : > { %v837_v0 = vmul.f32 0.01, %v799_v58  ;;  %v802_v1 = vadd.f32 %v1338_v54, %v801_v62  ;;  %vm829_vm9 = vcmp.gt.f32.partialorder %v799_v58, 0.0 }
 0x26b   : > { %vm832_vm10 = vcmp.gt.f32.partialorder %v810_v61, 0.0  ;;  %v840_v2 = vmul.f32 0.01, %v810_v61  ;;  %v847_v3 = vsel %vm831_vm8, %v807_v56, %v839_v60 }
 0x26c   : > { %vm830_vm11 = vcmp.gt.f32.partialorder %v802_v1, 0.0  ;;  %v838_v4 = vmul.f32 0.01, %v802_v1  ;;  %v862_v5 = vmul.f32 %v1347_v63, %v847_v3  ;;  %v845_v6 = vsel %vm829_vm9, %v799_v58, %v837_v0 }
 0x26d   : > { %v848_v7 = vsel %vm832_vm10, %v810_v61, %v840_v2  ;;  %v860_v8 = vmul.f32 %v1347_v63, %v845_v6 }
 0x26e   : > { %872 = vadd.xlane.f32.xlu1 %v862_v5  ;;  %v952_v9 = vpack.c.bf16 %v848_v7, %v847_v3  ;;  %v846_v10 = vsel %vm830_vm11, %v802_v1, %v838_v4  ;;  %v863_v12 = vmul.f32 %v1347_v63, %v848_v7 }
 0x26f   : > { %v951_v11 = vpack.c.bf16 %v846_v10, %v845_v6  ;;  %868 = vadd.xlane.f32.xlu0 %v860_v8  ;;  %v861_v13 = vmul.f32 %v1347_v63, %v846_v10 }
 0x271   : > { %1096 = vmatmul.mubr.bf16.vlgmr.msra.gmra.mrb[0].mxu0 %v951_v11 }
 0x272   : > { %874 = vadd.xlane.f32.xlu1 %v863_v12  ;;  %1105 = vmatprep.mubr.bf16.mxu0 %v1824_v53 }
 0x273   : > { %870 = vadd.xlane.f32.xlu0 %v861_v13 }
 0x276   : > { %v1456_v14 = vpop.f32.mrb[20].mxu1 }
 0x277   : > { %v823_v15 = vadd.f32 %v1456_v14, %v1338_v54  ;;  %v814_v16 = vpop.f32.mrb[21].mxu1 }
 0x278   : > { %v815_v17 = vadd.f32 %v1338_v54, %v814_v16  ;;  %v1457_v18 = vpop.f32.mrb[22].mxu1 }
 0x279   : > { %v843_v19 = vmul.f32 0.01, %v823_v15  ;;  %v826_v20 = vadd.f32 %v1457_v18, %v1338_v54  ;;  %v817_v21 = vpop.f32.mrb[23].mxu1  ;;  %1106 = vmatmul.mubr.bf16.gmra.mrb[4].mxu0 %v952_v9  ;;  %vm835_vm13 = vcmp.gt.f32.partialorder %v823_v15, 0.0 }
 0x27a   : > { %v841_v22 = vmul.f32 0.01, %v815_v17  ;;  %v818_v23 = vadd.f32 %v1338_v54, %v817_v21  ;;  %vm833_vm12 = vcmp.gt.f32.partialorder %v815_v17, 0.0  ;;  %1115 = vmatprep.mubr.bf16.mxu0 %v1824_v53  ;;  %v973_v21 = vlaneseq }
 0x27b   : > { %v844_v24 = vmul.f32 0.01, %v826_v20  ;;  %vm836_vm14 = vcmp.gt.f32.partialorder %v826_v20, 0.0  ;;  %v851_v28 = vsel %vm835_vm13, %v823_v15, %v843_v19 }
 0x27c   : > { %v842_v25 = vmul.f32 0.01, %v818_v23  ;;  %v849_v26 = vsel %vm833_vm12, %v815_v17, %v841_v22  ;;  %vm834_vm15 = vcmp.gt.f32.partialorder %v818_v23, 0.0  ;;  %v866_v34 = vmul.f32 %v1347_v63, %v851_v28 }
 0x27d   : > { %v864_v27 = vmul.f32 %v1347_v63, %v849_v26  ;;  %v852_v29 = vsel %vm836_vm14, %v826_v20, %v844_v24  ;;  %v974_v22 = vshrl.u32 %v973_v21, 7  ;;  %v971_v24 = vld [vmem:[%s2228_s6] sm:$0x3] }
 0x27e   : > { %v850_v30 = vsel %vm834_vm15, %v818_v23, %v842_v25  ;;  %v954_v31 = vpack.c.bf16 %v852_v29, %v851_v28  ;;  %v867_v35 = vmul.f32 %v1347_v63, %v852_v29 }
 0x27f   : > { %876 = vadd.xlane.f32.xlu0 %v864_v27  ;;  %v865_v32 = vmul.f32 %v1347_v63, %v850_v30  ;;  %v953_v33 = vpack.c.bf16 %v850_v30, %v849_v26  ;;  %v975_v23 = vsub.s32 0, %v974_v22  ;;  %v979_v25 = vsub.s32 1, %v974_v22 }
 0x281   : > { %878 = vadd.xlane.f32.xlu1 %v865_v32  ;;  %1116 = vmatmul.mubr.bf16.gmra.mrb[8].mxu0 %v953_v33  ;;  %v976_v26 = vrot.slane %v971_v24, %v975_v23  ;;  %v980_v27 = vrot.slane %v971_v24, %v979_v25 }
 0x282   : > { %1125 = vmatprep.mubr.bf16.mxu0 %v1824_v53 }
 0x283   : > { %880 = vadd.xlane.f32.xlu0 %v866_v34 }
 0x285   : > { %882 = vadd.xlane.f32.xlu1 %v867_v35 }
 0x289   : > { %1126 = vmatmul.mubr.bf16.gmra.mrb[12].mxu0 %v954_v31 }
 0x2fb   : > { %v873_v37 = vpop.xlane.xlu1 %872 }
 0x2fc   : > { %v888_v38 = vadd.f32 %v885_v36, %v873_v37  ;;  %v869_v39 = vpop.xlane.xlu0 %868 }
 0x2fd   : > { %v886_v40 = vadd.f32 %v885_v36, %v869_v39 }
 0x2fe   : > { %v1350_v41 = vmul.f32 -1.442695, %v888_v38 }
 0x2ff   : > { %v1348_v42 = vmul.f32 -1.442695, %v886_v40  ;;  %v875_v43 = vpop.xlane.xlu1 %874 }
 0x300   : > { %1592 = vpow2.f32 %v1350_v41  ;;  %v889_v44 = vadd.f32 %v885_v36, %v875_v43  ;;  %v871_v45 = vpop.xlane.xlu0 %870 }
 0x301   : > { %1594 = vpow2.f32 %v1348_v42  ;;  %v887_v46 = vadd.f32 %v885_v36, %v871_v45 }
 0x302   : > { %v1351_v47 = vmul.f32 -1.442695, %v889_v44 }
 0x303   : > { %v1349_v48 = vmul.f32 -1.442695, %v887_v46 }
 0x304   : > { %1596 = vpow2.f32 %v1351_v47 }
 0x305   : > { %1598 = vpow2.f32 %v1349_v48 }
 0x30a   : > { %v1593_v49 = vpop.eup %1592 }
 0x30b   : > { %v1595_v50 = vpop.eup %1594  ;;  %v920_v51 = vadd.f32 1.0, %v1593_v49 }
 0x30c   : > { %v918_v52 = vadd.f32 1.0, %v1595_v50  ;;  %v877_v53 = vpop.xlane.xlu0 %876 }
 0x30d   : > { %1600 = vrcp.f32 %v920_v51  ;;  %v890_v54 = vadd.f32 %v885_v36, %v877_v53 }
 0x30e   : > { %v1597_v55 = vpop.eup %1596  ;;  %1602 = vrcp.f32 %v918_v52  ;;  %v879_v56 = vpop.xlane.xlu1 %878 }
 0x30f   : > { %v1599_v57 = vpop.eup %1598  ;;  %v921_v58 = vadd.f32 1.0, %v1597_v55  ;;  %v1352_v59 = vmul.f32 -1.442695, %v890_v54  ;;  %v891_v60 = vadd.f32 %v885_v36, %v879_v56 }
 0x310   : > { %v919_v61 = vadd.f32 1.0, %v1599_v57  ;;  %v881_v62 = vpop.xlane.xlu0 %880 }
 0x311   : > { %1604 = vrcp.f32 %v921_v58  ;;  %v1353_v63 = vmul.f32 -1.442695, %v891_v60  ;;  %v892_v0 = vadd.f32 %v885_v36, %v881_v62 }
 0x312   : > { %1606 = vrcp.f32 %v919_v61  ;;  %v883_v1 = vpop.xlane.xlu1 %882 }
 0x313   : > { %1608 = vpow2.f32 %v1352_v59  ;;  %v1354_v2 = vmul.f32 -1.442695, %v892_v0  ;;  %v893_v3 = vadd.f32 %v885_v36, %v883_v1 }
 0x314   : > { %1610 = vpow2.f32 %v1353_v63 }
 0x315   : > { %1612 = vpow2.f32 %v1354_v2  ;;  %v1355_v4 = vmul.f32 -1.442695, %v893_v3 }
 0x317   : > { %v1601_v5 = vpop.eup %1600  ;;  %1614 = vpow2.f32 %v1355_v4 }
 0x318   : > { %v1603_v6 = vpop.eup %1602  ;;  %945 = vst.msk [vmem:[%s2131_s23 + $0x10] sm:$0xff] %vm942_vm0, %v1601_v5 }
 0x319   : > { %943 = vst.msk [vmem:[%s2131_s23] sm:$0xff] %vm942_vm0, %v1603_v6 }
 0x31b   : > { %v1605_v7 = vpop.eup %1604 }
 0x31c   : > { %v1607_v8 = vpop.eup %1606  ;;  %946 = vst.msk [vmem:[%s2131_s23 + $0x18] sm:$0xff] %vm942_vm0, %v1605_v7 }
 0x31d   : > { %v1609_v9 = vpop.eup %1608  ;;  %944 = vst.msk [vmem:[%s2131_s23 + $0x8] sm:$0xff] %vm942_vm0, %v1607_v8 }
 0x31e   : > { %v1611_v10 = vpop.eup %1610  ;;  %v922_v11 = vadd.f32 1.0, %v1609_v9 }
 0x31f   : > { %v1613_v12 = vpop.eup %1612  ;;  %v923_v13 = vadd.f32 1.0, %v1611_v10 }
 0x320   : > { %1616 = vrcp.f32 %v922_v11  ;;  %v924_v14 = vadd.f32 1.0, %v1613_v12 }
 0x321   : > { %v1615_v15 = vpop.eup %1614  ;;  %1618 = vrcp.f32 %v923_v13 }
 0x322   : > { %1620 = vrcp.f32 %v924_v14  ;;  %v925_v16 = vadd.f32 1.0, %v1615_v15 }
 0x324   : > { %1622 = vrcp.f32 %v925_v16 }
 0x32a   : > { %v1617_v17 = vpop.eup %1616 }
 0x32b   : > { %v1619_v18 = vpop.eup %1618  ;;  %947 = vst.msk [vmem:[%s2131_s23 + $0x20] sm:$0xff] %vm942_vm0, %v1617_v17 }
 0x32c   : > { %v1621_v19 = vpop.eup %1620  ;;  %948 = vst.msk [vmem:[%s2131_s23 + $0x28] sm:$0xff] %vm942_vm0, %v1619_v18 }
 0x32d   : > { %949 = vst.msk [vmem:[%s2131_s23 + $0x30] sm:$0xff] %vm942_vm0, %v1621_v19 }
 0x32e   : > { %v1623_v20 = vpop.eup %1622 }
 0x32f   : > { %950 = vst.msk [vmem:[%s2131_s23 + $0x38] sm:$0xff] %vm942_vm0, %v1623_v20 }
 0x344   : > { %v1097_v28 = vpop.f32.mrb[0].mxu0 }
 0x345   : > { %v1098_v29 = vadd.f32 %v1097_v28, %v976_v26  ;;  %v1099_v30 = vpop.f32.mrb[1].mxu0 }
 0x346   : > { %v1100_v31 = vadd.f32 %v1099_v30, %v980_v27  ;;  %v1101_v32 = vpop.f32.mrb[2].mxu0 }
 0x347   : > { %1136 = vst [vmem:[%s2154_s22] sm:$0xff] %v1098_v29  ;;  %v1102_v33 = vadd.f32 %v1101_v32, %v976_v26  ;;  %v1103_v34 = vpop.f32.mrb[3].mxu0 }
 0x348   : > { %1137 = vst [vmem:[%s2154_s22 + $0x8] sm:$0xff] %v1100_v31  ;;  %v1104_v35 = vadd.f32 %v1103_v34, %v980_v27 }
 0x349   : > { %1138 = vst [vmem:[%s2154_s22 + $0x10] sm:$0xff] %v1102_v33 }
 0x34a   : > { %1139 = vst [vmem:[%s2154_s22 + $0x18] sm:$0xff] %v1104_v35 }
 0x34c   : > { %v1107_v36 = vpop.f32.mrb[4].mxu0 }
 0x34d   : > { %v1108_v37 = vadd.f32 %v1107_v36, %v976_v26  ;;  %v1109_v38 = vpop.f32.mrb[5].mxu0 }
 0x34e   : > { %v1110_v39 = vadd.f32 %v1109_v38, %v980_v27  ;;  %v1111_v40 = vpop.f32.mrb[6].mxu0 }
 0x34f   : > { %1140 = vst [vmem:[%s2154_s22 + $0x20] sm:$0xff] %v1108_v37  ;;  %v1112_v41 = vadd.f32 %v1111_v40, %v976_v26  ;;  %v1113_v42 = vpop.f32.mrb[7].mxu0 }
 0x350   : > { %1141 = vst [vmem:[%s2154_s22 + $0x28] sm:$0xff] %v1110_v39  ;;  %v1114_v43 = vadd.f32 %v1113_v42, %v980_v27 }
 0x351   : > { %1142 = vst [vmem:[%s2154_s22 + $0x30] sm:$0xff] %v1112_v41 }
 0x352   : > { %1143 = vst [vmem:[%s2154_s22 + $0x38] sm:$0xff] %v1114_v43 }
 0x354   : > { %v1117_v44 = vpop.f32.mrb[8].mxu0 }
 0x355   : > { %v1118_v45 = vadd.f32 %v1117_v44, %v976_v26  ;;  %v1119_v46 = vpop.f32.mrb[9].mxu0 }
 0x356   : > { %v1120_v47 = vadd.f32 %v1119_v46, %v980_v27  ;;  %v1121_v48 = vpop.f32.mrb[10].mxu0 }
 0x357   : > { %1144 = vst [vmem:[%s2154_s22 + $0x40] sm:$0xff] %v1118_v45  ;;  %v1122_v49 = vadd.f32 %v1121_v48, %v976_v26  ;;  %v1123_v50 = vpop.f32.mrb[11].mxu0 }
 0x358   : > { %1145 = vst [vmem:[%s2154_s22 + $0x48] sm:$0xff] %v1120_v47  ;;  %v1124_v51 = vadd.f32 %v1123_v50, %v980_v27 }
 0x359   : > { %1146 = vst [vmem:[%s2154_s22 + $0x50] sm:$0xff] %v1122_v49 }
 0x35a   : > { %1147 = vst [vmem:[%s2154_s22 + $0x58] sm:$0xff] %v1124_v51 }
 0x35c   : > { %v1127_v52 = vpop.f32.mrb[12].mxu0 }
 0x35d   : > { %v1128_v53 = vadd.f32 %v1127_v52, %v976_v26  ;;  %v1129_v54 = vpop.f32.mrb[13].mxu0 }
 0x35e   : > { %v1130_v55 = vadd.f32 %v1129_v54, %v980_v27  ;;  %v1131_v56 = vpop.f32.mrb[14].mxu0 }
 0x35f   : > { %1148 = vst [vmem:[%s2154_s22 + $0x60] sm:$0xff] %v1128_v53  ;;  %v1132_v57 = vadd.f32 %v1131_v56, %v976_v26  ;;  %v1133_v58 = vpop.f32.mrb[15].mxu0 }
 0x360   : > { %1149 = vst [vmem:[%s2154_s22 + $0x68] sm:$0xff] %v1130_v55  ;;  %v1134_v59 = vadd.f32 %v1133_v58, %v980_v27 }
 0x361   : > { %1150 = vst [vmem:[%s2154_s22 + $0x70] sm:$0xff] %v1132_v57 }
 0x362   : > { %1151 = vst [vmem:[%s2154_s22 + $0x78] sm:$0xff] %v1134_v59 }
 0x363   : > { %1751 = shalt.err (!%p1748_p9)
}
 0x364   : > { %s1752_s23 = scalar_lea.hbm %s2174_s26, 2048  ;;  %s1756_s22 = scalar_lea.hbm %s2256_s30, 8192 }
 0x365   : > { %p1753_p13 = scmp.ne.s32.totalorder %s2174_s26, %s1752_s23  ;;  %p1757_p12 = scmp.lt.u32.totalorder %s2174_s26, %s2256_s30 }
 0x366   : > { %p1758_p6 = scmp.lt.u32.totalorder %s1756_s22, %s1752_s23  ;;  %p1760_p3 = scmp.lt.u32.totalorder %s1752_s23, %s2174_s26 }
 0x367   : > { %p1754_p10 = pnand %p1753_p13, %p2030_p5 }
 0x368   : > { %p1759_p0 = por %p1758_p6, %p1757_p12 }
 0x369   : > { %p1755_p8 = pneg %p1754_p10 }
 0x36a   : > { %p1761_p7 = por %p1760_p3, %p1759_p0 }
 0x36c   : > { %p1762_p11 = pnand %p1761_p7, %p1755_p8 }
 0x36e   : > { %1765 = shalt.err (!%p1762_p11)
}
 0x36f   : > { %s1826_s19 = smov 256   ;;  %s1827_s24 = smov 16  }
 0x370   : > { %1472 = dma.vmem_to_hbm [thread:$0]  (%p2030_p5), %s2176_s28, 2048, %s2174_s26, %s1158_s8, %s1826_s19, %s1826_s19, %s1827_s24  }
 0x371 PF: > { %s2257_s15 = sld [smem:[#allocation16_spill]]  ;;  %s2258_s11 = sld [smem:[#allocation17_spill]] }
 0x372   : > { %p1499_p2 = scmp.ge.s32.totalorder %s1812_s18, 2 }
 0x377   : > { %s1199_s21 = sand.u32 1, %s2257_s15   ;;  %p2259_p1 = scmp.ne.s32.totalorder %s2258_s11, 0 }
 0x378   : > { %s1200_s23 = scalar_lea.sflag [#allocation5], %s1199_s21 }
 0x379   : > { %p1489_p4 = pnand %p1499_p2, %p2259_p1 }
 0x37b   : > { %1795 = dma.done.wait (!%p1489_p4), %s1200_s23, 2048  }
 0x37c   : > { %1797 = vsyncadd (!%p1489_p4), %s1200_s23, 4294965248  ;;  %p27_p9 = scmp.ge.s32.totalorder %s2016_s10, 6   ;;  %s2260_s15 = smov %s1804_s16 }
 0x37d   : > { %s2261_s16 = smov %s1808_s17  ;;  %s2262_s17 = smov %s2026_s12 }
 0x37e   : > { %s2263_s18 = smov %s2016_s10  ;;  %29 = sbr.rel (!%p27_p9) target bundleno = 10 (0xa), region = 125 }
 0x385   :  { %1205 = vsyncpa [#allocation4], 1 }
 0x386   :  { %1207 = vsyncpa [#allocation4 + $0x1], 1 }
 0x387   :  { %1208 = vsyncpa [#allocation7], 1 }
 0x388   :  { %1209 = vsyncpa [#allocation10], 1 }
 0x389   :  { %1210 = vsyncpa [#allocation5], 1 }
 0x38a   :  { %1212 = vsyncpa [#allocation5 + $0x1], 1 }

</bundles_post_ra>
